<compile_context>
chip_gen: v6e
topology: v6e:2x2x1
jax: 0.10.0
libtpu: 0.0.40
codegen_flags: <defaults>
</compile_context>

<pallas_src>
import jax
import jax.numpy as jnp
from jax.experimental import pallas as pl
from jax.experimental.pallas import tpu as pltpu


def _attention_kernel(hidden_ref, enc_ref, wh_ref, we_ref, b_ref, v_ref, out_ref):
    # Per grid step (batch tile):
    #   hidden_ref: (tb, H)    f32
    #   enc_ref:    (tb, S, H) f32 or bf16
    #   wh_ref:     (H, H)     f32
    #   we_ref:     (H, H)     same dtype as enc
    #   b_ref:      (1, H)     f32
    #   v_ref:      (1, H)     f32
    #   out_ref:    (tb, S)    f32
    tb, S, H = enc_ref.shape

    hidden = hidden_ref[...]
    enc = enc_ref[...]
    wh = wh_ref[...]
    we = we_ref[...]
    bias = b_ref[...]                      # (1, H)
    v_row = v_ref[...].reshape(1, 1, H)    # hoisted broadcast of v

    # Hidden contribution + bias: S-invariant, computed once per batch tile.
    part_h = jnp.dot(hidden, wh, preferred_element_type=jnp.float32) + bias   # (tb, H)

    # Encoder contribution: fold batch into rows -> one MXU matmul with full rows.
    part_e = jnp.dot(enc.reshape(tb * S, H), we,
                     preferred_element_type=jnp.float32).reshape(tb, S, H)

    # energy = tanh(attn(concat(hidden, enc)))  (f32 tanh on the EUP)
    energy = jnp.tanh(part_e + part_h[:, None, :])                            # (tb, S, H)

    # v-projection (H -> 1) as VPU multiply + cross-lane reduction (avoids an
    # N=1 MXU matmul that wastes 99% of the systolic columns).
    scores = jnp.sum(energy * v_row, axis=-1)                                 # (tb, S)

    # Softmax over the sequence dimension (full S resident in this tile).
    m = jnp.max(scores, axis=1, keepdims=True)
    e = jnp.exp(scores - m)
    out_ref[...] = (e / jnp.sum(e, axis=1, keepdims=True)).astype(out_ref.dtype)


def make_attention_params(attn_w, attn_b, v_w, *, compute_dtype=jnp.float32):
    """Split/transpose the PyTorch Linear weights ONCE (not per forward call).

    attn_w: (H, 2H) = nn.Linear(2H, H).weight   (concat order: hidden, enc)
    attn_b: (H,)    = nn.Linear(2H, H).bias
    v_w:    (1, H)  = nn.Linear(H, 1, bias=False).weight
    compute_dtype: dtype for the encoder matmul inputs (bf16 on v6e/v7x halves
                   HBM bytes; accumulation / tanh / softmax stay in f32).
    """
    H = attn_b.shape[0]
    wh = jnp.asarray(attn_w[:, :H].T, jnp.float32)               # (H, H) hidden part
    we = jnp.asarray(attn_w[:, H:].T).astype(compute_dtype)      # (H, H) encoder part
    b = jnp.asarray(attn_b, jnp.float32).reshape(1, H)
    v = jnp.asarray(v_w, jnp.float32).reshape(1, H)
    return {"wh": wh, "we": we, "b": b, "v": v, "compute_dtype": compute_dtype}


def _choose_block_b(B, S, H, itemsize, budget_bytes=8 << 20):
    """Largest power-of-two multiple of 8 dividing B whose double-buffered
    encoder tile stays under ~8 MiB (safe w.r.t. v7x's 64 MiB VMEM)."""
    if B % 8 != 0:
        return B  # tiny / ragged batch: one full-dim block (layout rule: full dims ok)
    tb = 8
    while B % (tb * 2) == 0 and 2 * (tb * 2) * S * H * itemsize <= budget_bytes:
        tb *= 2
    return tb


def attention_forward(params, hidden, encoder_outputs, *, block_b=None):
    """hidden: (B, H), encoder_outputs: (B, S, H) -> softmax attention (B, S) f32."""
    B, H = hidden.shape
    S = encoder_outputs.shape[1]
    cdt = params["compute_dtype"]

    hidden = hidden.astype(jnp.float32)
    enc = encoder_outputs.astype(cdt)   # bf16 here halves the dominant HBM traffic

    tb = block_b if block_b is not None else _choose_block_b(
        B, S, H, jnp.dtype(cdt).itemsize)
    assert B % tb == 0 and (tb == B or tb % 8 == 0), "bad batch tile"
    grid = (B // tb,)

    kernel = pl.pallas_call(
        _attention_kernel,
        out_shape=jax.ShapeDtypeStruct((B, S), jnp.float32),
        grid_spec=pltpu.PrefetchScalarGridSpec(
            num_scalar_prefetch=0,
            grid=grid,
            in_specs=[
                pl.BlockSpec((tb, H), lambda i: (i, 0)),        # hidden (per batch tile)
                pl.BlockSpec((tb, S, H), lambda i: (i, 0, 0)),  # encoder_outputs (streamed)
                pl.BlockSpec((H, H), lambda i: (0, 0)),         # wh (resident)
                pl.BlockSpec((H, H), lambda i: (0, 0)),         # we (resident)
                pl.BlockSpec((1, H), lambda i: (0, 0)),         # bias
                pl.BlockSpec((1, H), lambda i: (0, 0)),         # v
            ],
            out_specs=pl.BlockSpec((tb, S), lambda i: (i, 0)),
        ),
        compiler_params=pltpu.CompilerParams(
            dimension_semantics=("parallel",),          # batch tiles independent -> 2 TCs on v7x
            vmem_limit_bytes=32 * 1024 * 1024,          # explicit; tiles sized well below this
        ),
    )
    return kernel(hidden, enc, params["wh"], params["we"], params["b"], params["v"])


def attention_reference(hidden, encoder_outputs, attn_w, attn_b, v_w):
    """Pure-JAX reference mirroring the PyTorch forward exactly."""
    S = encoder_outputs.shape[1]
    h_rep = jnp.repeat(hidden[:, None, :], S, axis=1)          # (B, S, H)
    cat = jnp.concatenate([h_rep, encoder_outputs], axis=2)    # (B, S, 2H)
    energy = jnp.tanh(cat @ attn_w.T + attn_b)                 # (B, S, H)
    attention = (energy @ v_w.T)[..., 0]                       # (B, S)
    return jax.nn.softmax(attention, axis=1)


if __name__ == "__main__":
    key = jax.random.PRNGKey(0)
    k1, k2, k3, k4, k5 = jax.random.split(key, 5)

    # ---- small shape matching the module (B=2, S=8, H=32) ----
    B, S, H = 2, 8, 32
    hidden = jax.random.normal(k1, (B, H), jnp.float32)
    enc = jax.random.normal(k2, (B, S, H), jnp.float32)

    # Parameter shapes per nn.Linear(2H, H) and nn.Linear(H, 1, bias=False).
    attn_w = jax.random.uniform(k3, (H, 2 * H), jnp.float32, -0.1, 0.1)
    attn_b = jax.random.uniform(k4, (H,), jnp.float32, -0.1, 0.1)
    v_w = jax.random.uniform(k5, (1, H), jnp.float32, -0.1, 0.1)

    params_f32 = make_attention_params(attn_w, attn_b, v_w)

    out = jax.block_until_ready(attention_forward(params_f32, hidden, enc))
    ref = attention_reference(hidden, enc, attn_w, attn_b, v_w)
    assert out.shape == (B, S)
    assert jnp.allclose(out, ref, atol=1e-5, rtol=1e-5), "f32 mismatch vs reference"
    assert jnp.allclose(jnp.sum(out, axis=1), 1.0, atol=1e-5), "softmax rows must sum to 1"

    # ---- larger shape exercising the batch-tiled grid (grid=(4,)) and a
    #      lane-dense (S=128) output tile ----
    B2, S2 = 32, 128
    hidden2 = jax.random.normal(k1, (B2, H), jnp.float32)
    enc2 = jax.random.normal(k2, (B2, S2, H), jnp.float32)
    out2 = jax.block_until_ready(attention_forward(params_f32, hidden2, enc2, block_b=8))
    ref2 = attention_reference(hidden2, enc2, attn_w, attn_b, v_w)
    assert jnp.allclose(out2, ref2, atol=1e-4, rtol=1e-4), "tiled f32 mismatch vs reference"
    assert jnp.allclose(jnp.sum(out2, axis=1), 1.0, atol=1e-5)

    # ---- bf16 encoder / matmul path (f32 accumulation, tanh, softmax):
    #      halves HBM bytes on v6e/v7x; numerics are slightly looser ----
    params_bf16 = make_attention_params(attn_w, attn_b, v_w, compute_dtype=jnp.bfloat16)
    out3 = jax.block_until_ready(attention_forward(params_bf16, hidden2, enc2, block_b=8))
    assert jnp.allclose(out3, ref2, atol=3e-2, rtol=3e-2), "bf16 mismatch vs reference"
    assert jnp.allclose(jnp.sum(out3, axis=1), 1.0, atol=1e-3)

    print("KERNEL_OK")
</pallas_src>

<mosaic_0001>
module attributes {stable_mosaic.version = 11 : i64} {
  func.func @_attention_kernel(%arg0: i32, %arg1: memref<2x32xf32, #tpu.memory_space<vmem>>, %arg2: memref<2x8x32xf32, #tpu.memory_space<vmem>>, %arg3: memref<32x32xf32, #tpu.memory_space<vmem>>, %arg4: memref<32x32xf32, #tpu.memory_space<vmem>>, %arg5: memref<1x32xf32, #tpu.memory_space<vmem>>, %arg6: memref<1x32xf32, #tpu.memory_space<vmem>>, %arg7: memref<2x8xf32, #tpu.memory_space<vmem>>) attributes {dimension_semantics = [#tpu.dimension_semantics<parallel>], iteration_bounds = array<i64: 1>, scalar_prefetch = 0 : i64, scratch_operands = 0 : i64, tpu.core_type = #tpu.core_type<tc>, window_params = [{transform_indices = @transform_0, window_bounds = array<i64: 2, 32>}, {transform_indices = @transform_1, window_bounds = array<i64: 2, 8, 32>}, {pipeline_mode = #tpu.pipeline_mode<synchronous>, transform_indices = @transform_2, window_bounds = array<i64: 32, 32>}, {pipeline_mode = #tpu.pipeline_mode<synchronous>, transform_indices = @transform_3, window_bounds = array<i64: 32, 32>}, {pipeline_mode = #tpu.pipeline_mode<synchronous>, transform_indices = @transform_4, window_bounds = array<i64: 1, 32>}, {pipeline_mode = #tpu.pipeline_mode<synchronous>, transform_indices = @transform_5, window_bounds = array<i64: 1, 32>}, {transform_indices = @transform_6, window_bounds = array<i64: 2, 8>}]} {
    %c0 = arith.constant 0 : index
    %c0_0 = arith.constant 0 : index
    %0 = vector.load %arg1[%c0, %c0_0] : memref<2x32xf32, #tpu.memory_space<vmem>>, vector<2x32xf32>
    %c0_1 = arith.constant 0 : index
    %c0_2 = arith.constant 0 : index
    %c0_3 = arith.constant 0 : index
    %1 = vector.load %arg2[%c0_1, %c0_2, %c0_3] : memref<2x8x32xf32, #tpu.memory_space<vmem>>, vector<2x8x32xf32>
    %c0_4 = arith.constant 0 : index
    %c0_5 = arith.constant 0 : index
    %2 = vector.load %arg3[%c0_4, %c0_5] : memref<32x32xf32, #tpu.memory_space<vmem>>, vector<32x32xf32>
    %c0_6 = arith.constant 0 : index
    %c0_7 = arith.constant 0 : index
    %3 = vector.load %arg4[%c0_6, %c0_7] : memref<32x32xf32, #tpu.memory_space<vmem>>, vector<32x32xf32>
    %c0_8 = arith.constant 0 : index
    %c0_9 = arith.constant 0 : index
    %4 = vector.load %arg5[%c0_8, %c0_9] : memref<1x32xf32, #tpu.memory_space<vmem>>, vector<1x32xf32>
    %c0_10 = arith.constant 0 : index
    %c0_11 = arith.constant 0 : index
    %5 = vector.load %arg6[%c0_10, %c0_11] : memref<1x32xf32, #tpu.memory_space<vmem>>, vector<1x32xf32>
    %6 = vector.shape_cast %5 : vector<1x32xf32> to vector<1x1x32xf32>
    %cst = arith.constant dense<0.000000e+00> : vector<2x32xf32>
    %7 = tpu.matmul %0, %2, %cst {dimension_numbers = #tpu.dot_dimension_numbers<[1], [0], [0], [1], [0, 0, 1, 1], [], []>} : vector<2x32xf32>, vector<32x32xf32>, vector<2x32xf32> -> vector<2x32xf32>
    %8 = vector.broadcast %4 : vector<1x32xf32> to vector<2x32xf32>
    %9 = arith.addf %7, %8 : vector<2x32xf32>
    %10 = vector.shape_cast %1 : vector<2x8x32xf32> to vector<16x32xf32>
    %cst_12 = arith.constant dense<0.000000e+00> : vector<16x32xf32>
    %11 = tpu.matmul %10, %3, %cst_12 {dimension_numbers = #tpu.dot_dimension_numbers<[1], [0], [0], [1], [0, 0, 1, 1], [], []>} : vector<16x32xf32>, vector<32x32xf32>, vector<16x32xf32> -> vector<16x32xf32>
    %12 = vector.shape_cast %11 : vector<16x32xf32> to vector<2x8x32xf32>
    %13 = vector.shape_cast %9 : vector<2x32xf32> to vector<2x1x32xf32>
    %14 = vector.broadcast %13 : vector<2x1x32xf32> to vector<2x8x32xf32>
    %15 = arith.addf %12, %14 : vector<2x8x32xf32>
    %16 = math.tanh %15 : vector<2x8x32xf32>
    %17 = vector.broadcast %6 : vector<1x1x32xf32> to vector<2x8x32xf32>
    %18 = arith.mulf %16, %17 : vector<2x8x32xf32>
    %cst_13 = arith.constant dense<0.000000e+00> : vector<2x8xf32>
    %19 = vector.multi_reduction <add>, %18, %cst_13 [2] : vector<2x8x32xf32> to vector<2x8xf32>
    %cst_14 = arith.constant dense<0xFF800000> : vector<2xf32>
    %20 = vector.multi_reduction <maximumf>, %19, %cst_14 [1] : vector<2x8xf32> to vector<2xf32>
    %21 = vector.shape_cast %20 : vector<2xf32> to vector<2x1xf32>
    %22 = vector.broadcast %21 : vector<2x1xf32> to vector<2x8xf32>
    %23 = arith.subf %19, %22 : vector<2x8xf32>
    %24 = math.exp %23 : vector<2x8xf32>
    %cst_15 = arith.constant dense<0.000000e+00> : vector<2xf32>
    %25 = vector.multi_reduction <add>, %24, %cst_15 [1] : vector<2x8xf32> to vector<2xf32>
    %26 = vector.shape_cast %25 : vector<2xf32> to vector<2x1xf32>
    %27 = vector.broadcast %26 : vector<2x1xf32> to vector<2x8xf32>
    %28 = arith.divf %24, %27 : vector<2x8xf32>
    %c0_16 = arith.constant 0 : index
    %c0_17 = arith.constant 0 : index
    %29 = vector.load %arg7[%c0_16, %c0_17] : memref<2x8xf32, #tpu.memory_space<vmem>>, vector<2x8xf32>
    tpu.vector_store %arg7[%c0_16, %c0_17], %28 {strides = array<i32>} : memref<2x8xf32, #tpu.memory_space<vmem>>, vector<2x8xf32>,
    return
  }
  func.func @transform_0(%arg0: i32) -> (i32, i32) {
    %c0_i32 = arith.constant 0 : i32
    %c0_i32_0 = arith.constant 0 : i32
    return %arg0, %c0_i32 : i32, i32
  }
  func.func @transform_1(%arg0: i32) -> (i32, i32, i32) {
    %c0_i32 = arith.constant 0 : i32
    %c0_i32_0 = arith.constant 0 : i32
    %c0_i32_1 = arith.constant 0 : i32
    return %arg0, %c0_i32, %c0_i32_0 : i32, i32, i32
  }
  func.func @transform_2(%arg0: i32) -> (i32, i32) {
    %c0_i32 = arith.constant 0 : i32
    %c0_i32_0 = arith.constant 0 : i32
    %c0_i32_1 = arith.constant 0 : i32
    return %c0_i32, %c0_i32_0 : i32, i32
  }
  func.func @transform_3(%arg0: i32) -> (i32, i32) {
    %c0_i32 = arith.constant 0 : i32
    %c0_i32_0 = arith.constant 0 : i32
    %c0_i32_1 = arith.constant 0 : i32
    return %c0_i32, %c0_i32_0 : i32, i32
  }
  func.func @transform_4(%arg0: i32) -> (i32, i32) {
    %c0_i32 = arith.constant 0 : i32
    %c0_i32_0 = arith.constant 0 : i32
    %c0_i32_1 = arith.constant 0 : i32
    return %c0_i32, %c0_i32_0 : i32, i32
  }
  func.func @transform_5(%arg0: i32) -> (i32, i32) {
    %c0_i32 = arith.constant 0 : i32
    %c0_i32_0 = arith.constant 0 : i32
    %c0_i32_1 = arith.constant 0 : i32
    return %c0_i32, %c0_i32_0 : i32, i32
  }
  func.func @transform_6(%arg0: i32) -> (i32, i32) {
    %c0_i32 = arith.constant 0 : i32
    %c0_i32_0 = arith.constant 0 : i32
    return %arg0, %c0_i32 : i32, i32
  }
}

</mosaic_0001>

<bundles_post_ra>
// kernel: tpu_custom_call.1
= control target key start
LH: loop header
LB: loop body
LE: loop exit
PB: predicated region body
PF: predicated region fallthrough
CT: control target
= control target key end

     0   :  { %11 = vsyncpa [#allocation3], 0  ;;  %s674_s0 = inlined_call_operand.hbm [shape: f32[2,32], index: 0, kind: input, shape index: {}]   ;;  %s675_s1 = inlined_call_operand.hbm [shape: f32[2,8,32], index: 1, kind: input, shape index: {}]   ;;  %s676_s2 = inlined_call_operand.hbm [shape: f32[32,32], index: 2, kind: input, shape index: {}]   ;;  %s677_s3 = inlined_call_operand.hbm [shape: f32[32,32], index: 3, kind: input, shape index: {}]   ;;  %s678_s4 = inlined_call_operand.vmem [shape: f32[1,32], index: 4, kind: input, shape index: {}]   ;;  %s679_s5 = inlined_call_operand.vmem [shape: f32[1,32], index: 5, kind: input, shape index: {}]   ;;  %s680_s6 = inlined_call_operand.hbm [shape: f32[2,8], index: 6, kind: output, shape index: {}]  }
   0x1   :  { %12 = vsyncpa [#allocation6], 0 }
   0x2   :  { %13 = vsyncpa [#allocation9], 0 }
   0x3   :  { %14 = vsyncpa [#allocation4], 0  ;;  %s581_s21 = smov [#allocation5]  }
   0x4   :  { %s30_s22 = sshll.u32 %s581_s21, 4  ;;  %s31_s22 = int_to_ptr.vmem [resolvable:$true] %s30_s22 }
   0x5   :  { %s481_s23 = scalar_lea.vmem %s31_s22, 256  ;;  %p486_p1 = scmp.lt.s32.totalorder %s31_s22, %s31_s22 }
   0x6   :  { %p482_p0 = scmp.ne.s32.totalorder %s31_s22, %s481_s23  ;;  %p487_p2 = scmp.lt.s32.totalorder %s481_s23, %s481_s23 }
   0x8   :  { %p488_p3 = por %p487_p2, %p486_p1 }
   0xa   :  { %p489_p4 = pnand %p488_p3, %p482_p0 }
   0xc   :  { %492 = shalt.err (!%p489_p4)
}
   0xd   :  { %s582_s24 = smov 128   ;;  %s583_s25 = smov 8  }
   0xe   :  { %36 = dma.hbm_to_vmem [thread:$0]  %s675_s1, 256, %s31_s22, [#allocation6], %s582_s24, %s582_s24, %s583_s25  }
   0xf   :  { %s584_s28 = smov [#allocation2]   ;;  %s585_s30 = smov [#allocation7]  }
  0x10   :  { %s21_s29 = sshll.u32 %s584_s28, 4  ;;  %s42_s7 = sshll.u32 %s585_s30, 4  ;;  %s22_s29 = int_to_ptr.vmem [resolvable:$true] %s21_s29  ;;  %s43_s7 = int_to_ptr.vmem [resolvable:$true] %s42_s7 }
  0x11   :  { %s501_s8 = scalar_lea.vmem %s22_s29, 32  ;;  %p506_p6 = scmp.lt.s32.totalorder %s22_s29, %s22_s29 }
  0x12   :  { %p502_p5 = scmp.ne.s32.totalorder %s22_s29, %s501_s8  ;;  %p507_p7 = scmp.lt.s32.totalorder %s501_s8, %s501_s8 }
  0x14   :  { %p508_p8 = por %p507_p7, %p506_p6 }
  0x16   :  { %p509_p9 = pnand %p508_p8, %p502_p5 }
  0x18   :  { %512 = shalt.err (!%p509_p9)
}
  0x19   :  { %24 = dma.hbm_to_vmem [thread:$0]  %s674_s0, 32, %s22_s29, [#allocation3]  }
  0x1a   :  { %s521_s11 = scalar_lea.vmem %s43_s7, 512  ;;  %p526_p11 = scmp.lt.s32.totalorder %s43_s7, %s43_s7 }
  0x1b   :  { %p522_p10 = scmp.ne.s32.totalorder %s43_s7, %s521_s11  ;;  %p527_p12 = scmp.lt.s32.totalorder %s521_s11, %s521_s11 }
  0x1d   :  { %p528_p13 = por %p527_p12, %p526_p11 }
  0x1f   :  { %p529_p0 = pnand %p528_p13, %p522_p10 }
  0x21   :  { %532 = shalt.err (!%p529_p0)
}
  0x22   :  { %48 = dma.hbm_to_vmem [thread:$0]  %s676_s2, 512, %s43_s7, [#allocation6], %s582_s24, %s582_s24, %s583_s25  }
  0x23   :  { %s586_s13 = smov [#allocation8]  }
  0x24   :  { %s54_s14 = sshll.u32 %s586_s13, 4  ;;  %s55_s14 = int_to_ptr.vmem [resolvable:$true] %s54_s14 }
  0x25   :  { %s541_s15 = scalar_lea.vmem %s55_s14, 512  ;;  %p546_p2 = scmp.lt.s32.totalorder %s55_s14, %s55_s14 }
  0x26   :  { %p542_p1 = scmp.ne.s32.totalorder %s55_s14, %s541_s15  ;;  %p547_p3 = scmp.lt.s32.totalorder %s541_s15, %s541_s15 }
  0x28   :  { %p548_p4 = por %p547_p3, %p546_p2 }
  0x2a   :  { %p549_p5 = pnand %p548_p4, %p542_p1 }
  0x2c   :  { %552 = shalt.err (!%p549_p5)
}
  0x2d   :  { %60 = dma.hbm_to_vmem [thread:$0]  %s677_s3, 512, %s55_s14, [#allocation9], %s582_s24, %s582_s24, %s583_s25  }
  0x2e   :  { %573 = dma.done.wait [#allocation3], 32  }
  0x2f   :  { %574 = vsyncadd [#allocation3], 4294967264 }
  0x30   :  { %575 = dma.done.wait [#allocation6], 768  }
  0x31   :  { %576 = vsyncadd [#allocation6], 4294966528 }
  0x32   :  { %577 = dma.done.wait [#allocation9], 512  }
  0x33   :  { %578 = vsyncadd [#allocation9], 4294966784  ;;  %v587_v0 = vmov 0.0   ;;  %vm588_vm0 = vmmov 0   ;;  %v83_v1 = vld [vmem:[#allocation7 + $0x18] sm:$0xff]  ;;  %v82_v2 = vld [vmem:[#allocation7 + $0x10] sm:$0xff]  ;;  %v255_v14 = vlaneseq }
  0x34   :  { %426 = vmatprep.subr.mxu0 %v587_v0  ;;  %434 = vmatprep.mubr.msk.f32.mxu0 %vm588_vm0, %v587_v0  ;;  %v87_v3 = vld [vmem:[#allocation8 + $0x18] sm:$0xff]  ;;  %v86_v4 = vld [vmem:[#allocation8 + $0x10] sm:$0xff]  ;;  %v81_v5 = vld [vmem:[#allocation7 + $0x8] sm:$0xff]  ;;  %vm96_vm1 = vcmask 261120   ;;  %v589_v12 = vmov 1966171168  }
  0x35   :  { %427 = vmatpush3.msra.mxu0 %v83_v1  ;;  %437 = vmatprep.subr.mxu1 %v87_v3  ;;  %v85_v6 = vld [vmem:[#allocation8 + $0x8] sm:$0xff]  ;;  %v80_v7 = vld [vmem:[#allocation7] sm:$0xff]  ;;  %v78_v10 = vld [vmem:[#allocation5] sm:$0xff]  ;;  %v253_v13 = vunpack.c.l.s4 %v589_v12  ;;  %v651_v16 = vshrl.u32 %v255_v14, 7  ;;  %v305_v40 = vand.u32 127, %v255_v14  ;;  %vm314_vm2 = vcmask 1041409  }
  0x36   :  { %428 = vmatprep.subr.mxu0 %v587_v0  ;;  %438 = vmatpush3.msra.mxu1 %v87_v3  ;;  %v84_v8 = vld [vmem:[#allocation8] sm:$0xff]  ;;  %v77_v9 = vld [vmem:[#allocation2] sm:$0x3]  ;;  %v79_v11 = vld [vmem:[#allocation5 + $0x8] sm:$0xff]  ;;  %vm317_vm3 = vcmask 58368   ;;  %v590_v48 = vmov 0  }
  0x37   :  { %429 = vmatpush3.msra.mxu0 %v82_v2  ;;  %439 = vmatprep.subr.mxu1 %v86_v4  ;;  %v254_v15 = vunpack.c.0.s8 %v253_v13  ;;  %v410_v17 = vld [vmem:[%s678_s4] ss:$0 sm:$0xff]  ;;  %v276_v23 = vsub.s32 0, %v651_v16  ;;  %v308_v42 = vsub.s32 %v305_v40, %v651_v16  ;;  %v328_v49 = vsub.s32 1, %v651_v16 }
  0x38   :  { %430 = vmatprep.subr.mxu0 %v587_v0  ;;  %440 = vmatpush3.msra.mxu1 %v86_v4  ;;  %v414_v33 = vld [vmem:[%s679_s5] ss:$0 sm:$0xff]  ;;  %s591_s5 = smov [#allocation10]  }
  0x39   :  { %431 = vmatpush3.msra.mxu0 %v81_v5  ;;  %441 = vmatprep.subr.mxu1 %v85_v6  ;;  %v257_v18 = vsub.s32 %v254_v15, %v651_v16  ;;  %s399_s18 = sshll.u32 %s591_s5, 4  ;;  %s400_s18 = int_to_ptr.vmem [resolvable:$true] %s399_s18 }
  0x3a   :  { %432 = vmatprep.subr.mxu0 %v587_v0  ;;  %442 = vmatpush3.msra.mxu1 %v85_v6  ;;  %s553_s19 = scalar_lea.vmem %s400_s18, 32  ;;  %p558_p7 = scmp.lt.s32.totalorder %s400_s18, %s400_s18 }
  0x3b   :  { %433 = vmatpush3.msra.mxu0 %v80_v7  ;;  %443 = vmatprep.subr.mxu1 %v84_v8  ;;  %p554_p6 = scmp.ne.s32.totalorder %s400_s18, %s553_s19  ;;  %p559_p8 = scmp.lt.s32.totalorder %s553_s19, %s553_s19 }
  0x3c   :  { %435 = vmatmul.mubr.msk.f32.vlgmr.msra.gmra.mxu0 %vm96_vm1, %v77_v9  ;;  %444 = vmatpush3.msra.mxu1 %v84_v8 }
  0x3d   :  { %445 = vmatprep.mubr.msk.f32.mxu1 %vm96_vm1, %v78_v10  ;;  %460 = vset.pattern.permute.xlu0 %v590_v48  ;;  %p560_p9 = por %p559_p8, %p558_p7 }
  0x3e   :  { %446 = vmatmul.mubr.msk.f32.vlgmr.msra.gmra.mxu1 %vm96_vm1, %v79_v11  ;;  %459 = vset.pattern.permute.xlu1 %v590_v48 }
  0x3f   :  { %p561_p10 = pnand %p560_p9, %p554_p6 }
  0xfc   :  { %v166_v19 = vpop.f32.mrf.mxu0 }
  0xfd   :  { %v167_v20 = vadd.f32 %v410_v17, %v166_v19 }
  0xfe   :  { %v436_v21 = vpop.f32.mrf.mxu0  ;;  %v447_v24 = vpop.f32.mrf.mxu1 }
  0xff   :  { %v258_v22 = vrot.slane %v167_v20, %v257_v18 }
 0x100   :  { %v242_v29 = vpop.f32.mrf.mxu1 }
 0x101   :  { %v259_v25 = vcombine.high %v258_v22, %v258_v22  ;;  %v266_v26 = vrot.slane %v258_v22, %v257_v18 }
 0x103   :  { %v273_v27 = vrot.slane %v259_v25, %v257_v18  ;;  %v277_v28 = vrot.slane %v266_v26, %v276_v23 }
 0x105   :  { %v281_v30 = vrot.slane %v273_v27, %v276_v23  ;;  %v284_v31 = vadd.f32 %v277_v28, %v242_v29 }
 0x107   :  { %v285_v32 = vadd.f32 %v447_v24, %v281_v30  ;;  %461 = vtanh.f32 %v284_v31 }
 0x109   :  { %463 = vtanh.f32 %v285_v32 }
 0x114   :  { %v462_v34 = vpop.eup %461 }
 0x115   :  { %v294_v35 = vmul.f32 %v462_v34, %v414_v33 }
 0x116   :  { %v464_v36 = vpop.eup %463 }
 0x117   :  { %v296_v37 = vsel %vm96_vm1, %v294_v35, 0.0  ;;  %v295_v38 = vmul.f32 %v464_v36, %v414_v33 }
 0x118   :  { %297 = vadd.xlane.f32.xlu0 %v296_v37 }
 0x119   :  { %v299_v39 = vsel %vm96_vm1, %v295_v38, 0.0 }
 0x11c   :  { %300 = vadd.xlane.f32.xlu0 %v299_v39 }
 0x1a1   :  { %v298_v41 = vpop.xlane.xlu0 %297 }
 0x1a2   :  { %v309_v44 = vrot.slane %v298_v41, %v308_v42 }
 0x1a5   :  { %v301_v43 = vpop.xlane.xlu0 %300 }
 0x1a6   :  { %v313_v45 = vrot.slane %v301_v43, %v308_v42 }
 0x1a8   :  { %v315_v46 = vsel %vm314_vm2, %v313_v45, %v309_v44 }
 0x1a9   :  { %v318_v47 = vsel %vm317_vm3, %v315_v46, -inf }
 0x1aa   :  { %319 = vmax.xlane.f32.xlu1 %v318_v47 }
 0x233   :  { %v320_v50 = vpop.xlane.xlu1 %319 }
 0x234   :  { %v325_v51 = vrot.slane %v320_v50, %v276_v23  ;;  %v329_v52 = vrot.slane %v320_v50, %v328_v49 }
 0x236   :  { %v332_v53 = vsub.f32 %v298_v41, %v325_v51  ;;  %v333_v54 = vsub.f32 %v301_v43, %v329_v52 }
 0x238   :  { %v334_v55 = vmul.f32 1.442695, %v332_v53  ;;  %v336_v56 = vmul.f32 1.442695, %v333_v54 }
 0x23a   :  { %465 = vpow2.f32 %v334_v55 }
 0x23b   :  { %467 = vpow2.f32 %v336_v56 }
 0x247   :  { %v466_v57 = vpop.eup %465 }
 0x248   :  { %v468_v58 = vpop.eup %467  ;;  %341 = vperm.xlu1 %459, %v466_v57  }
 0x249   :  { %344 = vperm.xlu0 %460, %v468_v58  }
 0x2c3   :  { %v342_v59 = vpop.permute.xlu1 %341 }
 0x2c4   :  { %v345_v60 = vpop.permute.xlu0 %344  ;;  %v349_v61 = vrot.slane %v342_v59, %v308_v42 }
 0x2c5   :  { %v353_v62 = vrot.slane %v345_v60, %v308_v42 }
 0x2c7   :  { %v354_v63 = vsel %vm314_vm2, %v353_v62, %v349_v61 }
 0x2c8   :  { %v356_v0 = vsel %vm317_vm3, %v354_v63, 0.0 }
 0x2c9   :  { %357 = vadd.xlane.f32.xlu1 %v356_v0 }
 0x352   :  { %v358_v1 = vpop.xlane.xlu1 %357 }
 0x353   :  { %v363_v2 = vrot.slane %v358_v1, %v276_v23  ;;  %v367_v3 = vrot.slane %v358_v1, %v328_v49 }
 0x355   :  { %469 = vrcp.f32 %v363_v2 }
 0x356   :  { %471 = vrcp.f32 %v367_v3 }
 0x362   :  { %v470_v4 = vpop.eup %469 }
 0x363   :  { %v371_v5 = vmul.f32 %v470_v4, %v466_v57  ;;  %v472_v6 = vpop.eup %471 }
 0x364   :  { %v373_v7 = vmul.f32 %v472_v6, %v468_v58 }
 0x365   :  { %377 = vperm.xlu0 %460, %v371_v5  }
 0x369   :  { %380 = vperm.xlu0 %460, %v373_v7  }
 0x3e0   :  { %v378_v8 = vpop.permute.xlu0 %377 }
 0x3e1   :  { %v385_v10 = vrot.slane %v378_v8, %v308_v42 }
 0x3e4   :  { %v381_v9 = vpop.permute.xlu0 %380 }
 0x3e5   :  { %v389_v11 = vrot.slane %v381_v9, %v308_v42 }
 0x3e7   :  { %v390_v12 = vsel %vm314_vm2, %v389_v11, %v385_v10 }
 0x3e8   :  { %392 = vst.msk [vmem:[#allocation10] sm:$0x3] %vm317_vm3, %v390_v12 }
 0x3e9   :  { %564 = shalt.err (!%p561_p10)
}
 0x3ea   :  { %402 = dma.vmem_to_hbm [thread:$0]  %s400_s18, 32, %s680_s6, [#allocation4]  }
 0x3eb   :  { %579 = dma.done.wait [#allocation4], 32  }
 0x3ec   :  { %580 = vsyncadd [#allocation4], 4294967264 }
 0x3ed   :  { %406 = vsyncpa [#allocation3], 1 }
 0x3ee   :  { %407 = vsyncpa [#allocation6], 1 }
 0x3ef   :  { %408 = vsyncpa [#allocation9], 1 }
 0x3f0   :  { %409 = vsyncpa [#allocation4], 1 }

</bundles_post_ra>
